<compile_context>
chip_gen: v7x
topology: tpu7x:2x2x1
jax: 0.10.0
libtpu: 0.0.40
codegen_flags: <defaults>
</compile_context>

<pallas_src>
import functools

import jax
import jax.numpy as jnp
from jax.experimental import pallas as pl
from jax.experimental.pallas import tpu as pltpu

_MIB = 1024 * 1024


def _round_up(v: int, m: int) -> int:
    return ((v + m - 1) // m) * m


def _round_down(v: int, m: int) -> int:
    return (v // m) * m


def _vmem_capacity_bytes() -> int:
    """Physical VMEM per TensorCore; conservative default if the query fails."""
    try:
        return int(pltpu.get_tpu_info().vmem_capacity_bytes)
    except Exception:
        return 64 * _MIB  # v7x-sized (smallest current generation)


# ---------------------------------------------------------------------------
# Fused resident kernel: pool + excitation MLP + scale, one HBM read of x.
# ---------------------------------------------------------------------------
def _fused_kernel(x_ref, w1t_ref, b1_ref, w2t_ref, b2_ref, out_ref, *, inv_hw):
    # x_ref/out_ref: (1, C, HW) resident slab for one batch element.
    # w1t_ref: (C, Ch), b1_ref: (1, Ch), w2t_ref: (Ch, C), b2_ref: (1, C)
    x = x_ref[...]
    y = jnp.sum(x.astype(jnp.float32), axis=-1) * inv_hw                 # (1, C)
    h = jnp.dot(y, w1t_ref[...], preferred_element_type=jnp.float32)
    h = jnp.maximum(h + b1_ref[...], 0.0)                                # (1, Ch)
    z = jnp.dot(h, w2t_ref[...], preferred_element_type=jnp.float32)
    s = jax.nn.sigmoid(z + b2_ref[...])                                  # (1, C)
    # NOTE: for bf16 x the gate is quantized to bf16 before the multiply.
    out_ref[...] = x * s[:, :, None].astype(x.dtype)


# ---------------------------------------------------------------------------
# Streamed fallback, pass 1: per-(b, c) spatial sums over flattened rows.
# ---------------------------------------------------------------------------
def _pool_kernel(x_ref, sum_ref, *, hw_total, hw_tile):
    # x_ref: (rows_tile, hw_tile); sum_ref: (rows_tile, 1) f32 (accumulator).
    h = pl.program_id(1)

    @pl.when(h == 0)
    def _():
        sum_ref[...] = jnp.zeros_like(sum_ref)

    xf = x_ref[...].astype(jnp.float32)
    # Mask lanes past the true HW extent (ragged last spatial tile).
    lane = jax.lax.broadcasted_iota(jnp.int32, xf.shape, 1) + h * hw_tile
    xf = jnp.where(lane < hw_total, xf, 0.0)
    sum_ref[...] += jnp.sum(xf, axis=-1, keepdims=True)


# ---------------------------------------------------------------------------
# Streamed fallback, pass 2: out = x * s  (lane-dense elementwise scale).
# ---------------------------------------------------------------------------
def _scale_kernel(x_ref, s_ref, out_ref):
    # x_ref/out_ref: (rows_tile, hw_tile); s_ref: (rows_tile, 1)
    out_ref[...] = x_ref[...] * s_ref[...].astype(x_ref.dtype)


def spectral_normalize(w):
    """Divide a Linear weight by its largest singular value.

    Hoist this out of the hot path (once per weight update).
    """
    # TODO(synk): PyTorch spectral_norm uses a persistent one-step power
    # iteration; this is the converged limit of that iteration.
    return w / jnp.linalg.svd(w, compute_uv=False)[0]


def channel_attention(x_nchw, w1n, b1, w2n, b2, *, force_streamed: bool = False):
    """x: (B, C, H, W). w1n: (Ch, C), w2n: (C, Ch) are spectral-normalized."""
    B, C, H, W = x_nchw.shape
    Ch = w1n.shape[0]
    HW = H * W
    itemsize = jnp.dtype(x_nchw.dtype).itemsize

    # --- generation-aware budgets (v7x: 64 MiB VMEM/TC, v5e/v6e: 128 MiB) ---
    vmem_cap = _vmem_capacity_bytes()
    small_vmem = vmem_cap <= 96 * _MIB
    fused_cap = (40 if small_vmem else 80) * _MIB       # resident-path budget
    stream_vmem_cap = (48 if small_vmem else 64) * _MIB
    block_budget = 4 * _MIB                             # streamed block target

    slab = C * HW * itemsize
    # double-buffered in + out slabs + f32 reduction copy + weights/margin
    fused_need = 4 * slab + C * HW * 4 + 2 * _MIB

    x3 = x_nchw.reshape(B, C, HW)   # free relayout (row-major view)

    # =======================================================================
    # Fused resident path: one HBM read + one write of x.
    # =======================================================================
    if (not force_streamed) and fused_need <= fused_cap:
        # TODO(synk): with B == 1 on v7x one TensorCore idles; splitting the HW
        # reduction across cores would need a cross-core partial-sum exchange.
        w1t = w1n.T.astype(jnp.float32)                 # (C, Ch)
        w2t = w2n.T.astype(jnp.float32)                 # (Ch, C)
        b1r = b1.reshape(1, Ch).astype(jnp.float32)
        b2r = b2.reshape(1, C).astype(jnp.float32)

        out3 = pl.pallas_call(
            functools.partial(_fused_kernel, inv_hw=1.0 / HW),
            out_shape=jax.ShapeDtypeStruct((B, C, HW), x_nchw.dtype),
            grid=(B,),
            in_specs=[
                pl.BlockSpec((1, C, HW), lambda b: (b, 0, 0)),
                pl.BlockSpec((C, Ch), lambda b: (0, 0)),
                pl.BlockSpec((1, Ch), lambda b: (0, 0)),
                pl.BlockSpec((Ch, C), lambda b: (0, 0)),
                pl.BlockSpec((1, C), lambda b: (0, 0)),
            ],
            out_specs=pl.BlockSpec((1, C, HW), lambda b: (b, 0, 0)),
            compiler_params=pltpu.CompilerParams(
                dimension_semantics=("parallel",),
                vmem_limit_bytes=int(min(fused_cap, fused_need + 8 * _MIB)),
            ),
        )(x3, w1t, b1r, w2t, b2r)
        return out3.reshape(B, C, H, W)

    # =======================================================================
    # Streamed fallback: flattened (B*C, HW) rows, ~4 MiB blocks, MLP in XLA.
    # =======================================================================
    R = B * C
    x2 = x3.reshape(R, HW)
    row_bytes = HW * itemsize
    min_rows = 8 if R >= 8 else R

    if min_rows * row_bytes <= block_budget:
        # Full HW as the lane axis; tile rows (multiple of 8) to ~block_budget.
        hw_tile = HW
        if R >= 8:
            cand = max(8, _round_down(block_budget // max(1, row_bytes), 8))
            rows_tile = R if cand >= R else cand
        else:
            rows_tile = R
    else:
        # Very large HW: tile the spatial axis in 128-lane multiples.
        rows_tile = min_rows
        hw_tile = max(128, _round_down(block_budget // max(1, rows_tile * itemsize), 128))
        if hw_tile >= HW:
            hw_tile = HW

    n_rows = pl.cdiv(R, rows_tile)
    n_hw = pl.cdiv(HW, hw_tile)
    block_bytes = rows_tile * hw_tile * itemsize
    stream_vmem = int(min(stream_vmem_cap, max(32 * _MIB, 5 * block_bytes)))

    # ---- pass 1: spatial sums (output doubles as the f32 accumulator) ----
    sums = pl.pallas_call(
        functools.partial(_pool_kernel, hw_total=HW, hw_tile=hw_tile),
        out_shape=jax.ShapeDtypeStruct((R, 1), jnp.float32),
        grid=(n_rows, n_hw),
        in_specs=[pl.BlockSpec((rows_tile, hw_tile), lambda r, h: (r, h))],
        out_specs=pl.BlockSpec((rows_tile, 1), lambda r, h: (r, 0)),
        compiler_params=pltpu.CompilerParams(
            dimension_semantics=("parallel", "arbitrary"),
            vmem_limit_bytes=stream_vmem,
        ),
    )(x2)

    # ---- tiny excitation MLP, batched over B, in plain XLA ----
    mean = sums.reshape(B, C) * (1.0 / HW)
    hid = jnp.maximum(mean @ w1n.T.astype(jnp.float32) + b1.astype(jnp.float32), 0.0)
    s = jax.nn.sigmoid(hid @ w2n.T.astype(jnp.float32) + b2.astype(jnp.float32))
    s_col = s.reshape(R, 1)

    # ---- pass 2: streamed elementwise scale ----
    out2 = pl.pallas_call(
        _scale_kernel,
        out_shape=jax.ShapeDtypeStruct((R, HW), x_nchw.dtype),
        grid=(n_rows, n_hw),
        in_specs=[
            pl.BlockSpec((rows_tile, hw_tile), lambda r, h: (r, h)),
            pl.BlockSpec((rows_tile, 1), lambda r, h: (r, 0)),
        ],
        out_specs=pl.BlockSpec((rows_tile, hw_tile), lambda r, h: (r, h)),
        compiler_params=pltpu.CompilerParams(
            dimension_semantics=("parallel", "parallel"),
            vmem_limit_bytes=stream_vmem,
        ),
    )(x2, s_col)
    return out2.reshape(B, C, H, W)


def reference(x, w1n, b1, w2n, b2):
    """Pure-JAX reference (same spectral-normalized weights)."""
    y = jnp.mean(x, axis=(2, 3))
    h = jnp.maximum(y @ w1n.T + b1, 0.0)
    s = jax.nn.sigmoid(h @ w2n.T + b2)
    return x * s[:, :, None, None]


if __name__ == "__main__":
    # channels must be divisible by reduction=8 -> C=16, hidden=2
    B, C, H, W = 2, 16, 16, 16
    reduction = 8
    Ch = C // reduction

    key = jax.random.PRNGKey(0)
    kx, kw1, kb1, kw2, kb2 = jax.random.split(key, 5)

    x = jax.random.normal(kx, (B, C, H, W), dtype=jnp.float32)
    w1 = jax.random.normal(kw1, (Ch, C), dtype=jnp.float32) * (1.0 / jnp.sqrt(C))
    b1 = jax.random.normal(kb1, (Ch,), dtype=jnp.float32) * 0.01
    w2 = jax.random.normal(kw2, (C, Ch), dtype=jnp.float32) * (1.0 / jnp.sqrt(Ch))
    b2 = jax.random.normal(kb2, (C,), dtype=jnp.float32) * 0.01

    # Spectral normalization hoisted out of the hot path (once per weight set).
    w1n = spectral_normalize(w1)
    w2n = spectral_normalize(w2)

    ref = reference(x, w1n, b1, w2n, b2)

    # Fused resident path (default for these shapes).
    fn = jax.jit(channel_attention)
    out = jax.block_until_ready(fn(x, w1n, b1, w2n, b2))
    assert out.shape == (B, C, H, W)
    assert jnp.allclose(out, ref, atol=1e-5, rtol=1e-5), "fused path mismatch"

    # Streamed fallback path (exercised explicitly to keep it tested).
    fn_stream = jax.jit(functools.partial(channel_attention, force_streamed=True))
    out_s = jax.block_until_ready(fn_stream(x, w1n, b1, w2n, b2))
    assert jnp.allclose(out_s, ref, atol=1e-5, rtol=1e-5), "streamed path mismatch"

    print("KERNEL_OK")
</pallas_src>

<mosaic_0001>
module attributes {stable_mosaic.version = 11 : i64} {
  func.func @_fused_kernel(%arg0: i32, %arg1: memref<1x16x256xf32, #tpu.memory_space<vmem>>, %arg2: memref<16x2xf32, #tpu.memory_space<vmem>>, %arg3: memref<1x2xf32, #tpu.memory_space<vmem>>, %arg4: memref<2x16xf32, #tpu.memory_space<vmem>>, %arg5: memref<1x16xf32, #tpu.memory_space<vmem>>, %arg6: memref<1x16x256xf32, #tpu.memory_space<vmem>>) attributes {dimension_semantics = [#tpu.dimension_semantics<parallel>], iteration_bounds = array<i64: 2>, scalar_prefetch = 0 : i64, scratch_operands = 0 : i64, tpu.core_type = #tpu.core_type<tc>, window_params = [{transform_indices = @transform_0, window_bounds = array<i64: 1, 16, 256>}, {pipeline_mode = #tpu.pipeline_mode<synchronous>, transform_indices = @transform_1, window_bounds = array<i64: 16, 2>}, {pipeline_mode = #tpu.pipeline_mode<synchronous>, transform_indices = @transform_2, window_bounds = array<i64: 1, 2>}, {pipeline_mode = #tpu.pipeline_mode<synchronous>, transform_indices = @transform_3, window_bounds = array<i64: 2, 16>}, {pipeline_mode = #tpu.pipeline_mode<synchronous>, transform_indices = @transform_4, window_bounds = array<i64: 1, 16>}, {transform_indices = @transform_5, window_bounds = array<i64: 1, 16, 256>}]} {
    %c0 = arith.constant 0 : index
    %c0_0 = arith.constant 0 : index
    %c0_1 = arith.constant 0 : index
    %0 = vector.load %arg1[%c0, %c0_0, %c0_1] : memref<1x16x256xf32, #tpu.memory_space<vmem>>, vector<1x16x256xf32>
    %cst = arith.constant dense<0.000000e+00> : vector<1x16xf32>
    %1 = vector.multi_reduction <add>, %0, %cst [2] : vector<1x16x256xf32> to vector<1x16xf32>
    %cst_2 = arith.constant 3.906250e-03 : f32
    %2 = vector.broadcast %cst_2 : f32 to vector<1x16xf32>
    %3 = arith.mulf %1, %2 : vector<1x16xf32>
    %c0_3 = arith.constant 0 : index
    %c0_4 = arith.constant 0 : index
    %4 = vector.load %arg2[%c0_3, %c0_4] : memref<16x2xf32, #tpu.memory_space<vmem>>, vector<16x2xf32>
    %cst_5 = arith.constant dense<0.000000e+00> : vector<1x2xf32>
    %5 = tpu.matmul %3, %4, %cst_5 {dimension_numbers = #tpu.dot_dimension_numbers<[1], [0], [0], [1], [0, 0, 1, 1], [], []>} : vector<1x16xf32>, vector<16x2xf32>, vector<1x2xf32> -> vector<1x2xf32>
    %c0_6 = arith.constant 0 : index
    %c0_7 = arith.constant 0 : index
    %6 = vector.load %arg3[%c0_6, %c0_7] : memref<1x2xf32, #tpu.memory_space<vmem>>, vector<1x2xf32>
    %7 = arith.addf %5, %6 : vector<1x2xf32>
    %cst_8 = arith.constant 0.000000e+00 : f32
    %8 = vector.broadcast %cst_8 : f32 to vector<1x2xf32>
    %9 = arith.maximumf %7, %8 : vector<1x2xf32>
    %c0_9 = arith.constant 0 : index
    %c0_10 = arith.constant 0 : index
    %10 = vector.load %arg4[%c0_9, %c0_10] : memref<2x16xf32, #tpu.memory_space<vmem>>, vector<2x16xf32>
    %cst_11 = arith.constant dense<0.000000e+00> : vector<1x16xf32>
    %11 = tpu.matmul %9, %10, %cst_11 {dimension_numbers = #tpu.dot_dimension_numbers<[1], [0], [0], [1], [0, 0, 1, 1], [], []>} : vector<1x2xf32>, vector<2x16xf32>, vector<1x16xf32> -> vector<1x16xf32>
    %c0_12 = arith.constant 0 : index
    %c0_13 = arith.constant 0 : index
    %12 = vector.load %arg5[%c0_12, %c0_13] : memref<1x16xf32, #tpu.memory_space<vmem>>, vector<1x16xf32>
    %13 = arith.addf %11, %12 : vector<1x16xf32>
    %14 = arith.negf %13 : vector<1x16xf32>
    %15 = math.exp %14 : vector<1x16xf32>
    %cst_14 = arith.constant 1.000000e+00 : f32
    %16 = vector.broadcast %cst_14 : f32 to vector<1x16xf32>
    %17 = arith.addf %16, %15 : vector<1x16xf32>
    %18 = arith.divf %16, %17 : vector<1x16xf32>
    %19 = vector.shape_cast %18 : vector<1x16xf32> to vector<1x16x1xf32>
    %20 = vector.broadcast %19 : vector<1x16x1xf32> to vector<1x16x256xf32>
    %21 = arith.mulf %0, %20 : vector<1x16x256xf32>
    %c0_15 = arith.constant 0 : index
    %c0_16 = arith.constant 0 : index
    %c0_17 = arith.constant 0 : index
    %22 = vector.load %arg6[%c0_15, %c0_16, %c0_17] : memref<1x16x256xf32, #tpu.memory_space<vmem>>, vector<1x16x256xf32>
    tpu.vector_store %arg6[%c0_15, %c0_16, %c0_17], %21 {strides = array<i32>} : memref<1x16x256xf32, #tpu.memory_space<vmem>>, vector<1x16x256xf32>,
    return
  }
  func.func @transform_0(%arg0: i32) -> (i32, i32, i32) {
    %c0_i32 = arith.constant 0 : i32
    %c0_i32_0 = arith.constant 0 : i32
    %c0_i32_1 = arith.constant 0 : i32
    return %arg0, %c0_i32, %c0_i32_0 : i32, i32, i32
  }
  func.func @transform_1(%arg0: i32) -> (i32, i32) {
    %c0_i32 = arith.constant 0 : i32
    %c0_i32_0 = arith.constant 0 : i32
    %c0_i32_1 = arith.constant 0 : i32
    return %c0_i32, %c0_i32_0 : i32, i32
  }
  func.func @transform_2(%arg0: i32) -> (i32, i32) {
    %c0_i32 = arith.constant 0 : i32
    %c0_i32_0 = arith.constant 0 : i32
    %c0_i32_1 = arith.constant 0 : i32
    return %c0_i32, %c0_i32_0 : i32, i32
  }
  func.func @transform_3(%arg0: i32) -> (i32, i32) {
    %c0_i32 = arith.constant 0 : i32
    %c0_i32_0 = arith.constant 0 : i32
    %c0_i32_1 = arith.constant 0 : i32
    return %c0_i32, %c0_i32_0 : i32, i32
  }
  func.func @transform_4(%arg0: i32) -> (i32, i32) {
    %c0_i32 = arith.constant 0 : i32
    %c0_i32_0 = arith.constant 0 : i32
    %c0_i32_1 = arith.constant 0 : i32
    return %c0_i32, %c0_i32_0 : i32, i32
  }
  func.func @transform_5(%arg0: i32) -> (i32, i32, i32) {
    %c0_i32 = arith.constant 0 : i32
    %c0_i32_0 = arith.constant 0 : i32
    %c0_i32_1 = arith.constant 0 : i32
    return %arg0, %c0_i32, %c0_i32_0 : i32, i32, i32
  }
}

</mosaic_0001>

<bundles_post_ra>
// kernel: channel_attention.1
= control target key start
LH: loop header
LB: loop body
LE: loop exit
PB: predicated region body
PF: predicated region fallthrough
CT: control target
= control target key end

     0   :  { %s582_s18 = smov 0   ;;  %s629_s0 = inlined_call_operand.vmem [shape: f32[2,16,256], index: 0, kind: input, shape index: {}]   ;;  %s630_s1 = inlined_call_operand.vmem [shape: f32[16,2], index: 1, kind: input, shape index: {}]   ;;  %s631_s2 = inlined_call_operand.vmem [shape: f32[1,2], index: 2, kind: input, shape index: {}]   ;;  %s632_s3 = inlined_call_operand.vmem [shape: f32[2,16], index: 3, kind: input, shape index: {}]   ;;  %s633_s4 = inlined_call_operand.vmem [shape: f32[1,16], index: 4, kind: input, shape index: {}]   ;;  %s634_s5 = inlined_call_operand.vmem [shape: f32[2,16,256], index: 5, kind: output, shape index: {}]  }
   0x1 LB: > { %s489_s19 = sadd.s32 4294967295, %s547_s18   ;;  %p493_p0 = scmp.ge.s32.totalorder %s547_s18, 1  ;;  %s547_s18 = sphi %s582_s18, %s15_s18  }
   0x2   : > { %p187_p1 = scmp.lt.s32.totalorder %s547_s18, 3 }
   0x4   : > { %p188_p2 = pnand %p493_p0, %p187_p1 }
   0x5   : > { %p215_p3 = scmp.lt.s32.totalorder (!%p188_p2), %s489_s19, 1  ;;  %v237_v6 = vld [vmem:[%s630_s1] sm:$0xff] (!%p188_p2)  ;;  %v238_v7 = vld [vmem:[%s630_s1 + $0x8] sm:$0xff] (!%p188_p2)  ;;  %v549_v9 = vmov (!%p188_p2), 0.0|0.0   ;;  %vm550_vm0 = vmmov (!%p188_p2), 0   ;;  %v551_v10 = vmov (!%p188_p2), 0.0   ;;  %v242_v11 = vlaneseq (!%p188_p2) }
   0x6   : > { %191 = sbr.rel (%p188_p2) target bundleno = 750 (0x2ee), region = 40  ;;  %v524_v8 = vpack.c.bf16 (!%p188_p2), %v238_v7, %v237_v6  ;;  %523 = vmatprep.subr.bf16.mxu0 (!%p188_p2), %v549_v9  ;;  %515 = vmatprep.mubr.msk.f32.mxu0 (!%p188_p2), %vm550_vm0, %v551_v10  ;;  %vm253_vm1 = vcmask (!%p188_p2), 130112   ;;  %vm255_vm2 = vcmask (!%p188_p2), 130048   ;;  %v329_v24 = vld [vmem:[%s632_s3] sm:$0x3] (!%p188_p2)  ;;  %vm335_vm3 = vcmask (!%p188_p2), 1041408  }
   0x7   : > { %518 = vmatprep.subr.mxu1 (!%p188_p2), %v551_v10  ;;  %520 = vmatprep.mubr.msk.f32.mxu1 (!%p188_p2), %vm550_vm0, %v551_v10  ;;  %v243_v12 = vand.u32 (!%p188_p2), 127, %v242_v11  ;;  %v245_v13 = vshrl.u32 (!%p188_p2), %v242_v11, 7  ;;  %v239_v25 = vld [vmem:[%s631_s2] sm:$0x1] (!%p188_p2)  ;;  %vm331_vm4 = vcmask (!%p188_p2), 15360  }
   0x8   : > { %525 = vmatpush3.bf16.msra.mxu0 (!%p188_p2), %v524_v8  ;;  %519 = vmatpush3.msk.msra.mxu1 (!%p188_p2), %vm335_vm3, %v329_v24  ;;  %v330_v30 = vld [vmem:[%s633_s4] sm:$0x1] (!%p188_p2) }
   0x9   : > { %v248_v14 = vadd.s32 (!%p188_p2), 4294967288, %v243_v12  ;;  %v246_v16 = vsub.s32 (!%p188_p2), %v243_v12, %v245_v13  ;;  %v417_v37 = vsub.s32 (!%p188_p2), 0, %v245_v13 }
   0xb   : > { %v251_v18 = vsub.s32 (!%p188_p2), %v248_v14, %v245_v13 }
   0xd   : > { %s636_s19 = smov (!%p215_p3, %s489_s19), 1 }
   0xe   : > { %s504_s20 = sshll.u32 %s636_s19, 5 }
   0xf   : > { %s219_s23 = scalar_lea.vmem %s629_s0, %s504_s20  ;;  %s224_s11 = scalar_lea.vmem %s634_s5, %s504_s20 }
  0x10   : > { %v225_v0 = vld [vmem:[%s219_s23] sm:$0xff]  ;;  %v226_v1 = vld [vmem:[%s219_s23 + $0x8] sm:$0xff]  ;;  %v598_v2 = vld [vmem:[%s219_s23 + $0x10] sm:$0xff] }
  0x11   : > { %v229_v3 = vadd.f32 %v226_v1, %v225_v0  ;;  %v600_v4 = vld [vmem:[%s219_s23 + $0x18] sm:$0xff] }
  0x12   : > { %v232_v5 = vadd.f32 %v600_v4, %v598_v2 }
  0x13   : > { %230 = vadd.xlane.f32.xlu0 %v229_v3 }
  0x17   : > { %233 = vadd.xlane.f32.xlu0 %v232_v5 }
  0xa0   : > { %v231_v15 = vpop.xlane.xlu0 %230 }
  0xa1   : > { %v235_v17 = vmul.f32 0.00390625, %v231_v15 }
  0xa3   : > { %v247_v21 = vrot.slane %v235_v17, %v246_v16 }
  0xa4   : > { %v234_v19 = vpop.xlane.xlu0 %233 }
  0xa5   : > { %v236_v20 = vmul.f32 0.00390625, %v234_v19 }
  0xa7   : > { %v252_v22 = vrot.slane %v236_v20, %v251_v18 }
  0xa9   : > { %v254_v23 = vsel %vm253_vm1, %v252_v22, %v247_v21 }
  0xaa   : > { %516 = vmatmul.mubr.msk.f32.vlgmr.msra.gmra.mrb[0].mxu0 %vm255_vm2, %v254_v23 }
 0x17d   : > { %v324_v26 = vpop.f32.mrb[0].mxu0 }
 0x17e   : > { %v325_v27 = vadd.f32 %v324_v26, %v239_v25  ;;  %v517_v28 = vpop.f32.mrb[1].mxu0 }
 0x180   : > { %v328_v29 = vmax.f32 %v325_v27, 0.0 }
 0x182   : > { %521 = vmatmul.mubr.msk.f32.vlgmr.msra.gmra.mrb[0].mxu1 %vm331_vm4, %v328_v29 }
 0x255   : > { %v405_v31 = vpop.f32.mrb[0].mxu1 }
 0x256   : > { %v406_v32 = vadd.f32 %v405_v31, %v330_v30  ;;  %v522_v33 = vpop.f32.mrb[1].mxu1 }
 0x258   : > { %v501_v34 = vmul.f32 -1.442695, %v406_v32 }
 0x25a   : > { %537 = vpow2.f32 %v501_v34 }
 0x264   : > { %v538_v35 = vpop.eup %537 }
 0x265   : > { %v412_v36 = vadd.f32 1.0, %v538_v35 }
 0x267   : > { %539 = vrcp.f32 %v412_v36 }
 0x271   : > { %v540_v38 = vpop.eup %539 }
 0x272   : > { %v418_v39 = vrot.slane %v540_v38, %v417_v37 }
 0x274   : > { %420 = vbcast.lane.b32.xlu1 %v418_v39, 256 }
 0x278   : > { %424 = vbcast.lane.b32.xlu1 %v418_v39, 264 }
 0x2e6   : > { %v421_v40 = vpop.permute.xlu1 %420 }
 0x2e7   : > { %v426_v41 = vmul.f32 %v421_v40, %v225_v0  ;;  %v427_v42 = vmul.f32 %v421_v40, %v226_v1 }
 0x2e9   : > { %430 = vst [vmem:[%s224_s11] sm:$0xff] %v426_v41  ;;  %431 = vst [vmem:[%s224_s11 + $0x8] sm:$0xff] %v427_v42 }
 0x2ea   : > { %v425_v43 = vpop.permute.xlu1 %424 }
 0x2eb   : > { %v428_v44 = vmul.f32 %v425_v43, %v598_v2  ;;  %v429_v45 = vmul.f32 %v425_v43, %v600_v4 }
 0x2ed   : > { %432 = vst [vmem:[%s224_s11 + $0x10] sm:$0xff] %v428_v44  ;;  %433 = vst [vmem:[%s224_s11 + $0x18] sm:$0xff] %v429_v45 }
 0x2ee PF: > { %s15_s18 = sadd.s32 1, %s547_s18  }
 0x2ef   : > { %p12_p4 = scmp.ge.s32.totalorder %s15_s18, 4  }
 0x2f1   :  { %14 = sbr.rel (!%p12_p4) target bundleno = 1 (0x1), region = 70 }

</bundles_post_ra>
